<compile_context>
chip_gen: v7x
topology: tpu7x:2x2x1
jax: 0.10.0
libtpu: 0.0.40
codegen_flags: <defaults>
</compile_context>

<pallas_src>
import jax
import jax.numpy as jnp
from jax.experimental import pallas as pl
from jax.experimental.pallas import tpu as pltpu


def _round_up(x, m):
    return ((x + m - 1) // m) * m


def mlp_kernel(x_ref, w1_ref, b1_ref, w2_ref, b2_ref, w3_ref, b3_ref, o_ref):
    """One batch tile of the full forward pass: 6 matmuls + ReLUs.

    Matmuls run on the MXU in the weights' dtype (bf16) with f32 accumulation;
    bias-add / ReLU stay in f32 (safe on all chips; v5e has no bf16 VPU).
    Weight/bias loads are hoisted so the unrolled 4x l2 loop reuses them.
    """
    w1, b1 = w1_ref[...], b1_ref[...]
    w2, b2 = w2_ref[...], b2_ref[...]
    w3, b3 = w3_ref[...], b3_ref[...]

    # x streams in as f32; cast to the MXU dtype in-kernel (avoids an extra
    # wrapper-side HBM read+write pass over the activations).
    x = x_ref[...].astype(w1.dtype)

    h = jnp.dot(x, w1, preferred_element_type=jnp.float32) + b1
    h = jnp.maximum(h, 0.0)

    # Hoist the b2 broadcast out of the unrolled loop (no CSE of broadcast_in_dim).
    b2_full = jnp.broadcast_to(b2, h.shape)
    for _ in range(4):  # l2 applied 4 times, as in the PyTorch forward
        h = jnp.dot(h.astype(w2.dtype), w2, preferred_element_type=jnp.float32)
        h = jnp.maximum(h + b2_full, 0.0)

    out = jnp.dot(h.astype(w3.dtype), w3, preferred_element_type=jnp.float32) + b3
    o_ref[...] = out.astype(o_ref.dtype)
    # TODO(synk): on v6e/v7x (bf16 VPU) the bias/ReLU epilogue could run in bf16
    # to cut VPU vreg traffic; kept f32 here so one kernel is correct on v5e too.


def _choose_block_b(batch):
    """Largest batch tile that amortizes per-step overhead.

    Single-TC chips (v5e/v6e): one big tile when possible — splitting only adds
    ~0.35 us/step and shrinks the MXU M-stream. For large batches target >=4
    grid steps so v7x (2 TCs via "parallel") gets >=2 pipelined steps per core
    and the x/out DMAs hide behind the matmul chain.
    """
    b8 = _round_up(batch, 8)
    if b8 <= 512:
        return b8
    return max(256, min(512, _round_up(pl.cdiv(batch, 4), 8)))


def prepare_params(params, *, compute_dtype=jnp.bfloat16):
    """Pad feature dims to 128 lanes and cast weights to the MXU dtype ONCE.

    Call at init time (not per forward): removes a full HBM read+write pass over
    every weight from the per-call path. Zero padding is mathematically neutral
    through every matmul + bias + ReLU.
    """
    in_dim, hid = params["w1"].shape
    out_dim = params["w3"].shape[1]
    in_p, hid_p, out_p = (_round_up(d, 128) for d in (in_dim, hid, out_dim))

    def pad2(a, rows, cols, dtype):
        a = a.astype(dtype)
        return jnp.pad(a, ((0, rows - a.shape[0]), (0, cols - a.shape[1])))

    padded = dict(
        w1=pad2(params["w1"], in_p, hid_p, compute_dtype),
        b1=pad2(params["b1"], 1, hid_p, jnp.float32),
        w2=pad2(params["w2"], hid_p, hid_p, compute_dtype),
        b2=pad2(params["b2"], 1, hid_p, jnp.float32),
        w3=pad2(params["w3"], hid_p, out_p, compute_dtype),
        b3=pad2(params["b3"], 1, out_p, jnp.float32),
    )
    dims = dict(in_dim=in_dim, hid=hid, out_dim=out_dim,
                in_p=in_p, hid_p=hid_p, out_p=out_p)
    return padded, dims


def mlp_forward(x, padded, dims, *, block_b=None):
    """x: (B, input_size) float32. padded/dims: output of prepare_params()."""
    B, in_dim = x.shape
    assert in_dim == dims["in_dim"]
    in_p, hid_p, out_p = dims["in_p"], dims["hid_p"], dims["out_p"]
    out_dim = dims["out_dim"]

    if block_b is None:
        block_b = _choose_block_b(B)
    block_b = _round_up(block_b, 8)
    B_p = _round_up(B, block_b)
    grid = (B_p // block_b,)

    # x stays f32; pad only if shapes actually require it (zero rows/lanes are
    # sliced away / stay zero through the math).
    if (B_p, in_p) != (B, in_dim):
        x = jnp.pad(x, ((0, B_p - B), (0, in_p - in_dim)))

    w1, b1 = padded["w1"], padded["b1"]
    w2, b2 = padded["w2"], padded["b2"]
    w3, b3 = padded["w3"], padded["b3"]

    # Grid-invariant (resident) blocks: single-buffer them. Their index_map is
    # constant, so double-buffering only doubles VMEM cost for no overlap gain.
    def resident(shape):
        return pl.BlockSpec(shape, lambda i: (0, 0), pipeline_mode=pl.Buffered(1))

    nbytes = lambda a: a.size * a.dtype.itemsize
    weight_bytes = sum(nbytes(a) for a in (w1, b1, w2, b2, w3, b3))  # 1x buffered
    x_tile_bytes = block_b * in_p * x.dtype.itemsize                 # 2x buffered
    out_tile_bytes = block_b * out_p * 4                             # 2x buffered
    act_bytes = 3 * block_b * hid_p * 4          # f32 h + bf16 cast temporaries
    vmem_needed = weight_bytes + 2 * x_tile_bytes + 2 * out_tile_bytes + act_bytes
    vmem_limit = int(min(128 << 20,
                         max(32 << 20, int(vmem_needed * 1.5) + (4 << 20))))

    flops = 2 * B_p * (in_p * hid_p + 4 * hid_p * hid_p + hid_p * out_p)
    bytes_accessed = nbytes(x) + weight_bytes + B_p * out_p * 4

    out_padded = pl.pallas_call(
        mlp_kernel,
        out_shape=jax.ShapeDtypeStruct((B_p, out_p), jnp.float32),
        grid_spec=pltpu.PrefetchScalarGridSpec(
            num_scalar_prefetch=0,
            grid=grid,
            in_specs=[
                pl.BlockSpec((block_b, in_p), lambda i: (i, 0)),  # x, batch-tiled
                resident((in_p, hid_p)),    # w1 (resident across batch tiles)
                resident((1, hid_p)),       # b1
                resident((hid_p, hid_p)),   # w2
                resident((1, hid_p)),       # b2
                resident((hid_p, out_p)),   # w3
                resident((1, out_p)),       # b3
            ],
            out_specs=pl.BlockSpec((block_b, out_p), lambda i: (i, 0)),  # lane-dense
        ),
        compiler_params=pltpu.CompilerParams(
            dimension_semantics=("parallel",),
            vmem_limit_bytes=vmem_limit),
        cost_estimate=pl.CostEstimate(
            flops=flops, transcendentals=0, bytes_accessed=bytes_accessed),
    )(x, w1, b1, w2, b2, w3, b3)
    # TODO(synk): once bf16 w2 reaches ~16-24 MiB (hid >= ~2900) the fully
    # resident-weight scheme approaches v7x's 64 MiB VMEM; switch to a
    # hidden-dim-tiled grid axis with an f32 accumulator (or per-layer calls).

    return out_padded[:B, :out_dim]


def init_params(key, input_size, hidden_size, output_size):
    ks = jax.random.split(key, 6)

    def lin(kw, kb, fan_in, fan_out):
        bound = 1.0 / jnp.sqrt(fan_in)  # PyTorch nn.Linear-style init bound
        w = jax.random.uniform(kw, (fan_in, fan_out), jnp.float32, -bound, bound)
        b = jax.random.uniform(kb, (1, fan_out), jnp.float32, -bound, bound)
        return w, b

    w1, b1 = lin(ks[0], ks[1], input_size, hidden_size)
    w2, b2 = lin(ks[2], ks[3], hidden_size, hidden_size)
    w3, b3 = lin(ks[4], ks[5], hidden_size, output_size)
    return dict(w1=w1, b1=b1, w2=w2, b2=b2, w3=w3, b3=b3)


def mlp_reference(x, p, compute_dtype=jnp.bfloat16):
    # Same numerics as the kernel: bf16 MXU operands, f32 accum, f32 bias/ReLU.
    c = lambda a: a.astype(compute_dtype)
    h = jnp.maximum(
        jnp.dot(c(x), c(p["w1"]), preferred_element_type=jnp.float32) + p["b1"], 0.0)
    for _ in range(4):
        h = jnp.maximum(
            jnp.dot(c(h), c(p["w2"]), preferred_element_type=jnp.float32) + p["b2"], 0.0)
    return jnp.dot(c(h), c(p["w3"]), preferred_element_type=jnp.float32) + p["b3"]


if __name__ == "__main__":
    key = jax.random.PRNGKey(0)
    kx, kp = jax.random.split(key)

    batch, input_size, hidden_size, output_size = 8, 16, 32, 8
    x = jax.random.normal(kx, (batch, input_size), jnp.float32)
    params = init_params(kp, input_size, hidden_size, output_size)

    padded, dims = prepare_params(params)   # one-time pad + bf16 cast of weights
    out = mlp_forward(x, padded, dims)
    out = jax.block_until_ready(out)

    ref = mlp_reference(x, params)
    assert out.shape == (batch, output_size)
    assert jnp.allclose(out, ref, atol=2e-3, rtol=2e-3)
    print("KERNEL_OK")
</pallas_src>

<mosaic_0001>
module attributes {stable_mosaic.version = 11 : i64} {
  func.func @mlp_kernel(%arg0: i32, %arg1: memref<8x128xf32, #tpu.memory_space<vmem>>, %arg2: memref<128x128xbf16, #tpu.memory_space<vmem>>, %arg3: memref<1x128xf32, #tpu.memory_space<vmem>>, %arg4: memref<128x128xbf16, #tpu.memory_space<vmem>>, %arg5: memref<1x128xf32, #tpu.memory_space<vmem>>, %arg6: memref<128x128xbf16, #tpu.memory_space<vmem>>, %arg7: memref<1x128xf32, #tpu.memory_space<vmem>>, %arg8: memref<8x128xf32, #tpu.memory_space<vmem>>) attributes {dimension_semantics = [#tpu.dimension_semantics<parallel>], iteration_bounds = array<i64: 1>, scalar_prefetch = 0 : i64, scratch_operands = 0 : i64, tpu.core_type = #tpu.core_type<tc>, window_params = [{transform_indices = @transform_0, window_bounds = array<i64: 8, 128>}, {pipeline_mode = #tpu.pipeline_mode<synchronous>, transform_indices = @transform_1, window_bounds = array<i64: 128, 128>}, {pipeline_mode = #tpu.pipeline_mode<synchronous>, transform_indices = @transform_2, window_bounds = array<i64: 1, 128>}, {pipeline_mode = #tpu.pipeline_mode<synchronous>, transform_indices = @transform_3, window_bounds = array<i64: 128, 128>}, {pipeline_mode = #tpu.pipeline_mode<synchronous>, transform_indices = @transform_4, window_bounds = array<i64: 1, 128>}, {pipeline_mode = #tpu.pipeline_mode<synchronous>, transform_indices = @transform_5, window_bounds = array<i64: 128, 128>}, {pipeline_mode = #tpu.pipeline_mode<synchronous>, transform_indices = @transform_6, window_bounds = array<i64: 1, 128>}, {transform_indices = @transform_7, window_bounds = array<i64: 8, 128>}]} {
    %c0 = arith.constant 0 : index
    %c0_0 = arith.constant 0 : index
    %0 = vector.load %arg2[%c0, %c0_0] : memref<128x128xbf16, #tpu.memory_space<vmem>>, vector<128x128xbf16>
    %c0_1 = arith.constant 0 : index
    %c0_2 = arith.constant 0 : index
    %1 = vector.load %arg3[%c0_1, %c0_2] : memref<1x128xf32, #tpu.memory_space<vmem>>, vector<1x128xf32>
    %c0_3 = arith.constant 0 : index
    %c0_4 = arith.constant 0 : index
    %2 = vector.load %arg4[%c0_3, %c0_4] : memref<128x128xbf16, #tpu.memory_space<vmem>>, vector<128x128xbf16>
    %c0_5 = arith.constant 0 : index
    %c0_6 = arith.constant 0 : index
    %3 = vector.load %arg5[%c0_5, %c0_6] : memref<1x128xf32, #tpu.memory_space<vmem>>, vector<1x128xf32>
    %c0_7 = arith.constant 0 : index
    %c0_8 = arith.constant 0 : index
    %4 = vector.load %arg6[%c0_7, %c0_8] : memref<128x128xbf16, #tpu.memory_space<vmem>>, vector<128x128xbf16>
    %c0_9 = arith.constant 0 : index
    %c0_10 = arith.constant 0 : index
    %5 = vector.load %arg7[%c0_9, %c0_10] : memref<1x128xf32, #tpu.memory_space<vmem>>, vector<1x128xf32>
    %c0_11 = arith.constant 0 : index
    %c0_12 = arith.constant 0 : index
    %6 = vector.load %arg1[%c0_11, %c0_12] : memref<8x128xf32, #tpu.memory_space<vmem>>, vector<8x128xf32>
    %7 = arith.truncf %6 : vector<8x128xf32> to vector<8x128xbf16>
    %cst = arith.constant dense<0.000000e+00> : vector<8x128xf32>
    %8 = tpu.matmul %7, %0, %cst {dimension_numbers = #tpu.dot_dimension_numbers<[1], [0], [0], [1], [0, 0, 1, 1], [], []>} : vector<8x128xbf16>, vector<128x128xbf16>, vector<8x128xf32> -> vector<8x128xf32>
    %9 = vector.broadcast %1 : vector<1x128xf32> to vector<8x128xf32>
    %10 = arith.addf %8, %9 : vector<8x128xf32>
    %cst_13 = arith.constant 0.000000e+00 : f32
    %11 = vector.broadcast %cst_13 : f32 to vector<8x128xf32>
    %12 = arith.maximumf %10, %11 : vector<8x128xf32>
    %13 = vector.shape_cast %3 : vector<1x128xf32> to vector<1x128xf32>
    %14 = vector.broadcast %13 : vector<1x128xf32> to vector<8x128xf32>
    %15 = arith.truncf %12 : vector<8x128xf32> to vector<8x128xbf16>
    %cst_14 = arith.constant dense<0.000000e+00> : vector<8x128xf32>
    %16 = tpu.matmul %15, %2, %cst_14 {dimension_numbers = #tpu.dot_dimension_numbers<[1], [0], [0], [1], [0, 0, 1, 1], [], []>} : vector<8x128xbf16>, vector<128x128xbf16>, vector<8x128xf32> -> vector<8x128xf32>
    %17 = arith.addf %16, %14 : vector<8x128xf32>
    %cst_15 = arith.constant 0.000000e+00 : f32
    %18 = vector.broadcast %cst_15 : f32 to vector<8x128xf32>
    %19 = arith.maximumf %17, %18 : vector<8x128xf32>
    %20 = arith.truncf %19 : vector<8x128xf32> to vector<8x128xbf16>
    %cst_16 = arith.constant dense<0.000000e+00> : vector<8x128xf32>
    %21 = tpu.matmul %20, %2, %cst_16 {dimension_numbers = #tpu.dot_dimension_numbers<[1], [0], [0], [1], [0, 0, 1, 1], [], []>} : vector<8x128xbf16>, vector<128x128xbf16>, vector<8x128xf32> -> vector<8x128xf32>
    %22 = arith.addf %21, %14 : vector<8x128xf32>
    %cst_17 = arith.constant 0.000000e+00 : f32
    %23 = vector.broadcast %cst_17 : f32 to vector<8x128xf32>
    %24 = arith.maximumf %22, %23 : vector<8x128xf32>
    %25 = arith.truncf %24 : vector<8x128xf32> to vector<8x128xbf16>
    %cst_18 = arith.constant dense<0.000000e+00> : vector<8x128xf32>
    %26 = tpu.matmul %25, %2, %cst_18 {dimension_numbers = #tpu.dot_dimension_numbers<[1], [0], [0], [1], [0, 0, 1, 1], [], []>} : vector<8x128xbf16>, vector<128x128xbf16>, vector<8x128xf32> -> vector<8x128xf32>
    %27 = arith.addf %26, %14 : vector<8x128xf32>
    %cst_19 = arith.constant 0.000000e+00 : f32
    %28 = vector.broadcast %cst_19 : f32 to vector<8x128xf32>
    %29 = arith.maximumf %27, %28 : vector<8x128xf32>
    %30 = arith.truncf %29 : vector<8x128xf32> to vector<8x128xbf16>
    %cst_20 = arith.constant dense<0.000000e+00> : vector<8x128xf32>
    %31 = tpu.matmul %30, %2, %cst_20 {dimension_numbers = #tpu.dot_dimension_numbers<[1], [0], [0], [1], [0, 0, 1, 1], [], []>} : vector<8x128xbf16>, vector<128x128xbf16>, vector<8x128xf32> -> vector<8x128xf32>
    %32 = arith.addf %31, %14 : vector<8x128xf32>
    %cst_21 = arith.constant 0.000000e+00 : f32
    %33 = vector.broadcast %cst_21 : f32 to vector<8x128xf32>
    %34 = arith.maximumf %32, %33 : vector<8x128xf32>
    %35 = arith.truncf %34 : vector<8x128xf32> to vector<8x128xbf16>
    %cst_22 = arith.constant dense<0.000000e+00> : vector<8x128xf32>
    %36 = tpu.matmul %35, %4, %cst_22 {dimension_numbers = #tpu.dot_dimension_numbers<[1], [0], [0], [1], [0, 0, 1, 1], [], []>} : vector<8x128xbf16>, vector<128x128xbf16>, vector<8x128xf32> -> vector<8x128xf32>
    %37 = vector.broadcast %5 : vector<1x128xf32> to vector<8x128xf32>
    %38 = arith.addf %36, %37 : vector<8x128xf32>
    %c0_23 = arith.constant 0 : index
    %c0_24 = arith.constant 0 : index
    %39 = vector.load %arg8[%c0_23, %c0_24] : memref<8x128xf32, #tpu.memory_space<vmem>>, vector<8x128xf32>
    tpu.vector_store %arg8[%c0_23, %c0_24], %38 {strides = array<i32>} : memref<8x128xf32, #tpu.memory_space<vmem>>, vector<8x128xf32>,
    return
  }
  func.func @transform_0(%arg0: i32) -> (i32, i32) {
    %c0_i32 = arith.constant 0 : i32
    %c0_i32_0 = arith.constant 0 : i32
    return %arg0, %c0_i32 : i32, i32
  }
  func.func @transform_1(%arg0: i32) -> (i32, i32) {
    %c0_i32 = arith.constant 0 : i32
    %c0_i32_0 = arith.constant 0 : i32
    %c0_i32_1 = arith.constant 0 : i32
    return %c0_i32, %c0_i32_0 : i32, i32
  }
  func.func @transform_2(%arg0: i32) -> (i32, i32) {
    %c0_i32 = arith.constant 0 : i32
    %c0_i32_0 = arith.constant 0 : i32
    %c0_i32_1 = arith.constant 0 : i32
    return %c0_i32, %c0_i32_0 : i32, i32
  }
  func.func @transform_3(%arg0: i32) -> (i32, i32) {
    %c0_i32 = arith.constant 0 : i32
    %c0_i32_0 = arith.constant 0 : i32
    %c0_i32_1 = arith.constant 0 : i32
    return %c0_i32, %c0_i32_0 : i32, i32
  }
  func.func @transform_4(%arg0: i32) -> (i32, i32) {
    %c0_i32 = arith.constant 0 : i32
    %c0_i32_0 = arith.constant 0 : i32
    %c0_i32_1 = arith.constant 0 : i32
    return %c0_i32, %c0_i32_0 : i32, i32
  }
  func.func @transform_5(%arg0: i32) -> (i32, i32) {
    %c0_i32 = arith.constant 0 : i32
    %c0_i32_0 = arith.constant 0 : i32
    %c0_i32_1 = arith.constant 0 : i32
    return %c0_i32, %c0_i32_0 : i32, i32
  }
  func.func @transform_6(%arg0: i32) -> (i32, i32) {
    %c0_i32 = arith.constant 0 : i32
    %c0_i32_0 = arith.constant 0 : i32
    %c0_i32_1 = arith.constant 0 : i32
    return %c0_i32, %c0_i32_0 : i32, i32
  }
  func.func @transform_7(%arg0: i32) -> (i32, i32) {
    %c0_i32 = arith.constant 0 : i32
    %c0_i32_0 = arith.constant 0 : i32
    return %arg0, %c0_i32 : i32, i32
  }
}

</mosaic_0001>

<bundles_post_ra>
// kernel: tpu_custom_call.1
= control target key start
LH: loop header
LB: loop body
LE: loop exit
PB: predicated region body
PF: predicated region fallthrough
CT: control target
= control target key end

     0   :  { %12 = vsyncpa [#allocation3], 0  ;;  %s1145_s0 = inlined_call_operand.hbm [shape: f32[8,128], index: 0, kind: input, shape index: {}]   ;;  %s1146_s1 = inlined_call_operand.hbm [shape: bf16[128,128], index: 1, kind: input, shape index: {}]   ;;  %s1147_s2 = inlined_call_operand.vmem [shape: f32[1,128], index: 2, kind: input, shape index: {}]   ;;  %s1148_s3 = inlined_call_operand.hbm [shape: bf16[128,128], index: 3, kind: input, shape index: {}]   ;;  %s1149_s4 = inlined_call_operand.vmem [shape: f32[1,128], index: 4, kind: input, shape index: {}]   ;;  %s1150_s5 = inlined_call_operand.hbm [shape: bf16[128,128], index: 5, kind: input, shape index: {}]   ;;  %s1151_s6 = inlined_call_operand.vmem [shape: f32[1,128], index: 6, kind: input, shape index: {}]   ;;  %s1152_s7 = inlined_call_operand.hbm [shape: f32[8,128], index: 7, kind: output, shape index: {}]  }
   0x1   :  { %13 = vsyncpa [#allocation6], 0 }
   0x2   :  { %14 = vsyncpa [#allocation9], 0 }
   0x3   :  { %15 = vsyncpa [#allocation4], 0  ;;  %s916_s24 = smov [#allocation5]   ;;  %s798_s28 = scalar_lea.hbm %s1146_s1, 1024 }
   0x4   :  { %s31_s25 = sshll.u32 %s916_s24, 4  ;;  %p799_p0 = scmp.ne.s32.totalorder %s1146_s1, %s798_s28  ;;  %s32_s25 = int_to_ptr.vmem [resolvable:$true] %s31_s25 }
   0x5   :  { %p802_p1 = scmp.lt.u32.totalorder %s798_s28, %s1146_s1 }
   0x7   :  { %p804_p2 = pnand %p802_p1, %p799_p0 }
   0x9   :  { %807 = shalt.err (!%p804_p2)
}
   0xa   :  { %s808_s10 = scalar_lea.vmem %s32_s25, 1024  ;;  %p813_p4 = scmp.lt.s32.totalorder %s32_s25, %s32_s25 }
   0xb   :  { %p809_p3 = scmp.ne.s32.totalorder %s32_s25, %s808_s10  ;;  %p814_p5 = scmp.lt.s32.totalorder %s808_s10, %s808_s10 }
   0xd   :  { %p815_p6 = por %p814_p5, %p813_p4 }
   0xf   :  { %p816_p7 = pnand %p815_p6, %p809_p3 }
  0x11   :  { %819 = shalt.err (!%p816_p7)
}
  0x12   :  { %s917_s11 = smov 64   ;;  %s918_s12 = smov 4  }
  0x13   :  { %37 = dma.hbm_to_vmem [thread:$0]  %s1146_s1, 1024, %s32_s25, [#allocation6], %s917_s11, %s917_s11, %s918_s12  }
  0x14   :  { %s919_s15 = smov [#allocation2]   ;;  %s920_s17 = smov [#allocation7]  }
  0x15   :  { %s22_s16 = sshll.u32 %s919_s15, 4  ;;  %s45_s18 = sshll.u32 %s920_s17, 4  ;;  %s23_s16 = int_to_ptr.vmem [resolvable:$true] %s22_s16  ;;  %s46_s18 = int_to_ptr.vmem [resolvable:$true] %s45_s18 }
  0x16   :  { %s820_s21 = scalar_lea.hbm %s1145_s0, 128 }
  0x17   :  { %p821_p8 = scmp.ne.s32.totalorder %s1145_s0, %s820_s21  ;;  %p824_p9 = scmp.lt.u32.totalorder %s820_s21, %s1145_s0 }
  0x19   :  { %p826_p10 = pnand %p824_p9, %p821_p8 }
  0x1b   :  { %829 = shalt.err (!%p826_p10)
}
  0x1c   :  { %s830_s1 = scalar_lea.vmem %s23_s16, 128  ;;  %p835_p12 = scmp.lt.s32.totalorder %s23_s16, %s23_s16 }
  0x1d   :  { %p831_p11 = scmp.ne.s32.totalorder %s23_s16, %s830_s1  ;;  %p836_p13 = scmp.lt.s32.totalorder %s830_s1, %s830_s1 }
  0x1f   :  { %p837_p0 = por %p836_p13, %p835_p12 }
  0x21   :  { %p838_p1 = pnand %p837_p0, %p831_p11 }
  0x23   :  { %841 = shalt.err (!%p838_p1)
}
  0x24   :  { %25 = dma.hbm_to_vmem [thread:$0]  %s1145_s0, 128, %s23_s16, [#allocation3]  }
  0x25   :  { %s842_s30 = scalar_lea.hbm %s1148_s3, 1024 }
  0x26   :  { %p843_p2 = scmp.ne.s32.totalorder %s1148_s3, %s842_s30  ;;  %p846_p3 = scmp.lt.u32.totalorder %s842_s30, %s1148_s3 }
  0x28   :  { %p848_p4 = pnand %p846_p3, %p843_p2 }
  0x2a   :  { %851 = shalt.err (!%p848_p4)
}
  0x2b   :  { %s852_s14 = scalar_lea.vmem %s46_s18, 1024  ;;  %p857_p6 = scmp.lt.s32.totalorder %s46_s18, %s46_s18 }
  0x2c   :  { %p853_p5 = scmp.ne.s32.totalorder %s46_s18, %s852_s14  ;;  %p858_p7 = scmp.lt.s32.totalorder %s852_s14, %s852_s14 }
  0x2e   :  { %p859_p8 = por %p858_p7, %p857_p6 }
  0x30   :  { %p860_p9 = pnand %p859_p8, %p853_p5 }
  0x32   :  { %863 = shalt.err (!%p860_p9)
}
  0x33   :  { %51 = dma.hbm_to_vmem [thread:$0]  %s1148_s3, 1024, %s46_s18, [#allocation6], %s917_s11, %s917_s11, %s918_s12  }
  0x34   :  { %s921_s16 = smov [#allocation8]   ;;  %s864_s21 = scalar_lea.hbm %s1150_s5, 1024 }
  0x35   :  { %s59_s17 = sshll.u32 %s921_s16, 4  ;;  %p865_p10 = scmp.ne.s32.totalorder %s1150_s5, %s864_s21  ;;  %s60_s17 = int_to_ptr.vmem [resolvable:$true] %s59_s17 }
  0x36   :  { %p868_p11 = scmp.lt.u32.totalorder %s864_s21, %s1150_s5 }
  0x38   :  { %p870_p12 = pnand %p868_p11, %p865_p10 }
  0x3a   :  { %873 = shalt.err (!%p870_p12)
}
  0x3b   :  { %s874_s1 = scalar_lea.vmem %s60_s17, 1024  ;;  %p879_p0 = scmp.lt.s32.totalorder %s60_s17, %s60_s17 }
  0x3c   :  { %p875_p13 = scmp.ne.s32.totalorder %s60_s17, %s874_s1  ;;  %p880_p1 = scmp.lt.s32.totalorder %s874_s1, %s874_s1 }
  0x3e   :  { %p881_p2 = por %p880_p1, %p879_p0 }
  0x40   :  { %p882_p3 = pnand %p881_p2, %p875_p13 }
  0x42   :  { %885 = shalt.err (!%p882_p3)
}
  0x43   :  { %65 = dma.hbm_to_vmem [thread:$0]  %s1150_s5, 1024, %s60_s17, [#allocation9], %s917_s11, %s917_s11, %s918_s12  }
  0x44   :  { %908 = dma.done.wait [#allocation3], 128  }
  0x45   :  { %909 = vsyncadd [#allocation3], 4294967168 }
  0x46   :  { %910 = dma.done.wait [#allocation6], 2048  }
  0x47   :  { %911 = vsyncadd [#allocation6], 4294965248 }
  0x48   :  { %912 = dma.done.wait [#allocation9], 1024  }
  0x49   :  { %913 = vsyncadd [#allocation9], 4294966272  ;;  %v922_v0 = vmov 0.0   ;;  %vm923_vm0 = vmmov 0   ;;  %v774_v1 = vld [vmem:[#allocation5] sm:$0xff]   ;;  %v775_v2 = vld [vmem:[#allocation5 + $0x8] sm:$0xff]  }
  0x4a   :  { %645 = vmatprep.subr.bf16.mxu0 %v922_v0  ;;  %661 = vmatprep.mubr.msk.bf16.mxu0 %vm923_vm0, %v922_v0  ;;  %v776_v3 = vld [vmem:[#allocation5 + $0x10] sm:$0xff]   ;;  %v1030_v4 = vld [vmem:[#allocation7] sm:$0xff]   ;;  %v777_v5 = vld [vmem:[#allocation5 + $0x18] sm:$0xff]   ;;  %s924_s27 = smov [#allocation10]  }
  0x4b   :  { %665 = vmatprep.subr.bf16.mxu1 %v922_v0  ;;  %681 = vmatprep.mubr.msk.bf16.mxu1 %vm923_vm0, %v922_v0  ;;  %v1034_v6 = vld [vmem:[#allocation7 + $0x8] sm:$0xff]   ;;  %v778_v7 = vld [vmem:[#allocation5 + $0x20] sm:$0xff]   ;;  %v1037_v8 = vld [vmem:[#allocation7 + $0x10] sm:$0xff]   ;;  %s553_s28 = sshll.u32 %s924_s27, 4  ;;  %s554_s28 = int_to_ptr.vmem [resolvable:$true] %s553_s28 }
  0x4c   :  { %646 = vmatpush3.bf16.msra.mxu0 %v774_v1  ;;  %666 = vmatpush3.bf16.msra.mxu1 %v1030_v4  ;;  %v779_v9 = vld [vmem:[#allocation5 + $0x28] sm:$0xff]   ;;  %v1042_v10 = vld [vmem:[#allocation7 + $0x18] sm:$0xff]   ;;  %v780_v11 = vld [vmem:[#allocation5 + $0x30] sm:$0xff]   ;;  %s886_s29 = scalar_lea.vmem %s554_s28, 128  ;;  %p891_p5 = scmp.lt.s32.totalorder %s554_s28, %s554_s28 }
  0x4d   :  { %647 = vmatprep.subr.bf16.mxu0 %v922_v0  ;;  %667 = vmatprep.subr.bf16.mxu1 %v922_v0  ;;  %v1049_v12 = vld [vmem:[#allocation7 + $0x20] sm:$0xff]   ;;  %v781_v13 = vld [vmem:[#allocation5 + $0x38] sm:$0xff]   ;;  %v1054_v15 = vld [vmem:[#allocation7 + $0x28] sm:$0xff]   ;;  %p887_p4 = scmp.ne.s32.totalorder %s554_s28, %s886_s29  ;;  %p892_p6 = scmp.lt.s32.totalorder %s886_s29, %s886_s29 }
  0x4e   :  { %v132_v14 = vld [vmem:[#allocation2] sm:$0xff]  ;;  %v788_v17 = vld [vmem:[#allocation7 + $0x30] sm:$0xff]   ;;  %v790_v42 = vld [vmem:[#allocation8] sm:$0xff]  }
  0x4f   :  { %v133_v16 = vpack.c.bf16 %v132_v14, %v132_v14  ;;  %v789_v18 = vld [vmem:[#allocation7 + $0x38] sm:$0xff]   ;;  %v791_v43 = vld [vmem:[#allocation8 + $0x8] sm:$0xff]   ;;  %v792_v44 = vld [vmem:[#allocation8 + $0x10] sm:$0xff]   ;;  %p893_p7 = por %p892_p6, %p891_p5 }
  0x50   :  { %648 = vmatpush3.bf16.msra.mxu0 %v775_v2  ;;  %668 = vmatpush3.bf16.msra.mxu1 %v1034_v6  ;;  %v564_v19 = vld [vmem:[%s1147_s2] ss:$0 sm:$0xff]  ;;  %v794_v46 = vld [vmem:[#allocation8 + $0x20] sm:$0xff]   ;;  %v795_v47 = vld [vmem:[#allocation8 + $0x28] sm:$0xff]  }
  0x51   :  { %649 = vmatprep.subr.bf16.mxu0 %v922_v0  ;;  %669 = vmatprep.subr.bf16.mxu1 %v922_v0  ;;  %v1100_v27 = vld [vmem:[%s1149_s4] ss:$0 sm:$0xff]  ;;  %v796_v55 = vld [vmem:[#allocation8 + $0x30] sm:$0xff]   ;;  %p894_p8 = pnand %p893_p7, %p887_p4 }
  0x52   :  { %v793_v45 = vld [vmem:[#allocation8 + $0x18] sm:$0xff]  }
  0x53   :  { %v797_v56 = vld [vmem:[#allocation8 + $0x38] sm:$0xff]  }
  0x54   :  { %650 = vmatpush3.bf16.msra.mxu0 %v776_v3  ;;  %670 = vmatpush3.bf16.msra.mxu1 %v1037_v8  ;;  %v582_v1 = vld [vmem:[%s1151_s6] ss:$0 sm:$0xff] }
  0x55   :  { %651 = vmatprep.subr.bf16.mxu0 %v922_v0  ;;  %671 = vmatprep.subr.bf16.mxu1 %v922_v0 }
  0x58   :  { %652 = vmatpush3.bf16.msra.mxu0 %v777_v5  ;;  %672 = vmatpush3.bf16.msra.mxu1 %v1042_v10 }
  0x59   :  { %653 = vmatprep.subr.bf16.mxu0 %v922_v0  ;;  %673 = vmatprep.subr.bf16.mxu1 %v922_v0 }
  0x5c   :  { %654 = vmatpush3.bf16.msra.mxu0 %v778_v7  ;;  %674 = vmatpush3.bf16.msra.mxu1 %v1049_v12 }
  0x5d   :  { %655 = vmatprep.subr.bf16.mxu0 %v922_v0  ;;  %675 = vmatprep.subr.bf16.mxu1 %v922_v0 }
  0x60   :  { %656 = vmatpush3.bf16.msra.mxu0 %v779_v9  ;;  %676 = vmatpush3.bf16.msra.mxu1 %v1054_v15 }
  0x61   :  { %657 = vmatprep.subr.bf16.mxu0 %v922_v0  ;;  %677 = vmatprep.subr.bf16.mxu1 %v922_v0 }
  0x64   :  { %658 = vmatpush3.bf16.msra.mxu0 %v780_v11  ;;  %678 = vmatpush3.bf16.msra.mxu1 %v788_v17 }
  0x65   :  { %659 = vmatprep.subr.bf16.mxu0 %v922_v0  ;;  %679 = vmatprep.subr.bf16.mxu1 %v922_v0 }
  0x68   :  { %660 = vmatpush3.bf16.msra.mxu0 %v781_v13  ;;  %680 = vmatpush3.bf16.msra.mxu1 %v789_v18 }
  0x69   :  { %685 = vmatprep.subr.bf16.mxu0 %v922_v0  ;;  %705 = vmatprep.subr.bf16.mxu1 %v922_v0 }
  0x6b   :  { %662 = vmatmul.mubr.bf16.vlgmr.msra.gmra.mrb[0].mxu0 %v133_v16 }
  0x6c   :  { %686 = vmatpush3.bf16.msra.mxu0 %v1030_v4  ;;  %701 = vmatprep.mubr.msk.bf16.mxu0 %vm923_vm0, %v922_v0 }
  0x6d   :  { %687 = vmatprep.subr.bf16.mxu0 %v922_v0 }
  0x70   :  { %688 = vmatpush3.bf16.msra.mxu0 %v1034_v6 }
  0x71   :  { %689 = vmatprep.subr.bf16.mxu0 %v922_v0 }
  0x74   :  { %690 = vmatpush3.bf16.msra.mxu0 %v1037_v8 }
  0x75   :  { %691 = vmatprep.subr.bf16.mxu0 %v922_v0 }
  0x78   :  { %692 = vmatpush3.bf16.msra.mxu0 %v1042_v10 }
  0x79   :  { %693 = vmatprep.subr.bf16.mxu0 %v922_v0 }
  0x7c   :  { %694 = vmatpush3.bf16.msra.mxu0 %v1049_v12 }
  0x7d   :  { %695 = vmatprep.subr.bf16.mxu0 %v922_v0 }
  0x80   :  { %696 = vmatpush3.bf16.msra.mxu0 %v1054_v15 }
  0x81   :  { %697 = vmatprep.subr.bf16.mxu0 %v922_v0 }
  0x84   :  { %698 = vmatpush3.bf16.msra.mxu0 %v788_v17 }
  0x85   :  { %699 = vmatprep.subr.bf16.mxu0 %v922_v0 }
  0x88   :  { %700 = vmatpush3.bf16.msra.mxu0 %v789_v18 }
  0x89   :  { %725 = vmatprep.subr.bf16.mxu0 %v922_v0 }
 0x13e   :  { %v222_v20 = vpop.f32.mrb[0].mxu0 }
 0x13f   :  { %v223_v21 = vadd.f32 %v564_v19, %v222_v20  ;;  %v663_v22 = vpop.f32.mrb[1].mxu0 }
 0x140   :  { %v225_v23 = vpop.f32.mrb[2].mxu0 }
 0x141   :  { %v228_v24 = vmax.f32 %v223_v21, 0.0  ;;  %v664_v25 = vpop.f32.mrb[3].mxu0 }
 0x143   :  { %v235_v26 = vpack.c.bf16 %v228_v24, %v228_v24 }
 0x145   :  { %682 = vmatmul.mubr.bf16.vlgmr.msra.gmra.mrb[0].mxu1 %v235_v26 }
 0x146   :  { %706 = vmatpush3.bf16.msra.mxu1 %v1030_v4  ;;  %721 = vmatprep.mubr.msk.bf16.mxu1 %vm923_vm0, %v922_v0 }
 0x147   :  { %707 = vmatprep.subr.bf16.mxu1 %v922_v0 }
 0x14a   :  { %708 = vmatpush3.bf16.msra.mxu1 %v1034_v6 }
 0x14b   :  { %709 = vmatprep.subr.bf16.mxu1 %v922_v0 }
 0x14e   :  { %710 = vmatpush3.bf16.msra.mxu1 %v1037_v8 }
 0x14f   :  { %711 = vmatprep.subr.bf16.mxu1 %v922_v0 }
 0x152   :  { %712 = vmatpush3.bf16.msra.mxu1 %v1042_v10 }
 0x153   :  { %713 = vmatprep.subr.bf16.mxu1 %v922_v0 }
 0x156   :  { %714 = vmatpush3.bf16.msra.mxu1 %v1049_v12 }
 0x157   :  { %715 = vmatprep.subr.bf16.mxu1 %v922_v0 }
 0x15a   :  { %716 = vmatpush3.bf16.msra.mxu1 %v1054_v15 }
 0x15b   :  { %717 = vmatprep.subr.bf16.mxu1 %v922_v0 }
 0x15e   :  { %718 = vmatpush3.bf16.msra.mxu1 %v788_v17 }
 0x15f   :  { %719 = vmatprep.subr.bf16.mxu1 %v922_v0 }
 0x162   :  { %720 = vmatpush3.bf16.msra.mxu1 %v789_v18 }
 0x163   :  { %745 = vmatprep.subr.bf16.mxu1 %v922_v0 }
 0x218   :  { %v318_v28 = vpop.f32.mrb[0].mxu1 }
 0x219   :  { %v319_v29 = vadd.f32 %v1100_v27, %v318_v28  ;;  %v683_v30 = vpop.f32.mrb[1].mxu1 }
 0x21a   :  { %v321_v31 = vpop.f32.mrb[2].mxu1 }
 0x21b   :  { %v324_v32 = vmax.f32 %v319_v29, 0.0  ;;  %v684_v33 = vpop.f32.mrb[3].mxu1 }
 0x21d   :  { %v325_v34 = vpack.c.bf16 %v324_v32, %v324_v32 }
 0x21f   :  { %702 = vmatmul.mubr.bf16.vlgmr.msra.gmra.mrb[4].mxu0 %v325_v34 }
 0x220   :  { %726 = vmatpush3.bf16.msra.mxu0 %v1030_v4  ;;  %741 = vmatprep.mubr.msk.bf16.mxu0 %vm923_vm0, %v922_v0 }
 0x221   :  { %727 = vmatprep.subr.bf16.mxu0 %v922_v0 }
 0x224   :  { %728 = vmatpush3.bf16.msra.mxu0 %v1034_v6 }
 0x225   :  { %729 = vmatprep.subr.bf16.mxu0 %v922_v0 }
 0x228   :  { %730 = vmatpush3.bf16.msra.mxu0 %v1037_v8 }
 0x229   :  { %731 = vmatprep.subr.bf16.mxu0 %v922_v0 }
 0x22c   :  { %732 = vmatpush3.bf16.msra.mxu0 %v1042_v10 }
 0x22d   :  { %733 = vmatprep.subr.bf16.mxu0 %v922_v0 }
 0x230   :  { %734 = vmatpush3.bf16.msra.mxu0 %v1049_v12 }
 0x231   :  { %735 = vmatprep.subr.bf16.mxu0 %v922_v0 }
 0x234   :  { %736 = vmatpush3.bf16.msra.mxu0 %v1054_v15 }
 0x235   :  { %737 = vmatprep.subr.bf16.mxu0 %v922_v0 }
 0x238   :  { %738 = vmatpush3.bf16.msra.mxu0 %v788_v17 }
 0x239   :  { %739 = vmatprep.subr.bf16.mxu0 %v922_v0 }
 0x23c   :  { %740 = vmatpush3.bf16.msra.mxu0 %v789_v18 }
 0x2f2   :  { %v360_v35 = vpop.f32.mrb[4].mxu0 }
 0x2f3   :  { %v361_v36 = vadd.f32 %v1100_v27, %v360_v35  ;;  %v703_v37 = vpop.f32.mrb[5].mxu0 }
 0x2f4   :  { %v363_v38 = vpop.f32.mrb[6].mxu0 }
 0x2f5   :  { %v366_v39 = vmax.f32 %v361_v36, 0.0  ;;  %v704_v40 = vpop.f32.mrb[7].mxu0 }
 0x2f7   :  { %v367_v41 = vpack.c.bf16 %v366_v39, %v366_v39 }
 0x2f9   :  { %722 = vmatmul.mubr.bf16.vlgmr.msra.gmra.mrb[4].mxu1 %v367_v41 }
 0x2fa   :  { %761 = vmatprep.mubr.msk.bf16.mxu1 %vm923_vm0, %v922_v0  ;;  %746 = vmatpush3.bf16.msra.mxu1 %v790_v42 }
 0x2fb   :  { %747 = vmatprep.subr.bf16.mxu1 %v922_v0 }
 0x2fe   :  { %748 = vmatpush3.bf16.msra.mxu1 %v791_v43 }
 0x2ff   :  { %749 = vmatprep.subr.bf16.mxu1 %v922_v0 }
 0x302   :  { %750 = vmatpush3.bf16.msra.mxu1 %v792_v44 }
 0x303   :  { %751 = vmatprep.subr.bf16.mxu1 %v922_v0 }
 0x306   :  { %752 = vmatpush3.bf16.msra.mxu1 %v793_v45 }
 0x307   :  { %753 = vmatprep.subr.bf16.mxu1 %v922_v0 }
 0x30a   :  { %754 = vmatpush3.bf16.msra.mxu1 %v794_v46 }
 0x30b   :  { %755 = vmatprep.subr.bf16.mxu1 %v922_v0 }
 0x30e   :  { %756 = vmatpush3.bf16.msra.mxu1 %v795_v47 }
 0x30f   :  { %757 = vmatprep.subr.bf16.mxu1 %v922_v0 }
 0x312   :  { %758 = vmatpush3.bf16.msra.mxu1 %v796_v55 }
 0x313   :  { %759 = vmatprep.subr.bf16.mxu1 %v922_v0 }
 0x316   :  { %760 = vmatpush3.bf16.msra.mxu1 %v797_v56 }
 0x3cc   :  { %v402_v48 = vpop.f32.mrb[4].mxu1 }
 0x3cd   :  { %v403_v49 = vadd.f32 %v1100_v27, %v402_v48  ;;  %v723_v50 = vpop.f32.mrb[5].mxu1 }
 0x3ce   :  { %v405_v51 = vpop.f32.mrb[6].mxu1 }
 0x3cf   :  { %v408_v52 = vmax.f32 %v403_v49, 0.0  ;;  %v724_v53 = vpop.f32.mrb[7].mxu1 }
 0x3d1   :  { %v409_v54 = vpack.c.bf16 %v408_v52, %v408_v52 }
 0x3d3   :  { %742 = vmatmul.mubr.bf16.vlgmr.msra.gmra.mrb[8].mxu0 %v409_v54 }
 0x4a6   :  { %v444_v57 = vpop.f32.mrb[8].mxu0 }
 0x4a7   :  { %v445_v58 = vadd.f32 %v1100_v27, %v444_v57  ;;  %v743_v59 = vpop.f32.mrb[9].mxu0 }
 0x4a8   :  { %v447_v60 = vpop.f32.mrb[10].mxu0 }
 0x4a9   :  { %v450_v61 = vmax.f32 %v445_v58, 0.0  ;;  %v744_v62 = vpop.f32.mrb[11].mxu0 }
 0x4ab   :  { %v451_v63 = vpack.c.bf16 %v450_v61, %v450_v61 }
 0x4ad   :  { %762 = vmatmul.mubr.bf16.vlgmr.msra.gmra.mrb[8].mxu1 %v451_v63 }
 0x580   :  { %v540_v2 = vpop.f32.mrb[8].mxu1 }
 0x581   :  { %v541_v3 = vadd.f32 %v582_v1, %v540_v2  ;;  %v763_v0 = vpop.f32.mrb[9].mxu1 }
 0x582   :  { %v543_v4 = vpop.f32.mrb[10].mxu1 }
 0x583   :  { %546 = vst [vmem:[#allocation10] sm:$0xff] %v541_v3  ;;  %v764_v5 = vpop.f32.mrb[11].mxu1 }
 0x584   :  { %897 = shalt.err (!%p894_p8)
}
 0x585   :  { %s898_s6 = scalar_lea.hbm %s1152_s7, 128 }
 0x586   :  { %p899_p9 = scmp.ne.s32.totalorder %s1152_s7, %s898_s6  ;;  %p902_p10 = scmp.lt.u32.totalorder %s898_s6, %s1152_s7 }
 0x588   :  { %p904_p11 = pnand %p902_p10, %p899_p9 }
 0x58a   :  { %907 = shalt.err (!%p904_p11)
}
 0x58b   :  { %556 = dma.vmem_to_hbm [thread:$0]  %s554_s28, 128, %s1152_s7, [#allocation4]  }
 0x58c   :  { %914 = dma.done.wait [#allocation4], 128  }
 0x58d   :  { %915 = vsyncadd [#allocation4], 4294967168 }
 0x58e   :  { %560 = vsyncpa [#allocation3], 1 }
 0x58f   :  { %561 = vsyncpa [#allocation6], 1 }
 0x590   :  { %562 = vsyncpa [#allocation9], 1 }
 0x591   :  { %563 = vsyncpa [#allocation4], 1 }

</bundles_post_ra>
